<compile_context>
chip_gen: v6e
topology: v6e:2x2x1
jax: 0.10.0
libtpu: 0.0.40
codegen_flags: <defaults>
</compile_context>

<pallas_src>
import functools

import jax
import jax.numpy as jnp
import numpy as np
from jax.experimental import pallas as pl
from jax.experimental.pallas import tpu as pltpu

BN_EPS = 1e-5


def _round_up(x, m):
    return (x + m - 1) // m * m


def _dst_src_tiling(N, row_tile, src_tile):
    """Pick (TM, n_rows, N_dst, TK, n_src, N_src).

    dst axis: near-divisor tile, multiple of 32 (int8 sublane packing); force
    >= 2 row tiles when the graph is large enough so the 'parallel' axis can
    be sharded across v7x's two TensorCores.
    src axis: pad only to a 128-lane quantum per K tile (never to a multiple
    of the row tile).
    """
    n_rows = max(1, -(-N // row_tile))
    if n_rows == 1 and N >= 64:
        n_rows = 2
    TM = _round_up(-(-N // n_rows), 32)
    N_dst = n_rows * TM

    n_src = max(1, -(-N // src_tile))
    TK = _round_up(-(-N // n_src), 128)
    N_src = n_src * TK
    return TM, n_rows, N_dst, TK, n_src, N_src


def prepare_gearnet_adjacency(adj, *, row_tile=512, src_tile=512):
    """Per-graph preprocessing, hoisted out of the per-layer forward.

    * pad dst rows / src cols (see _dst_src_tiling) and cast to int8 (exact
      for a 0/1 adjacency; halves the dominant HBM stream vs bf16),
    * precompute per-etype in-degrees deg[n, e] = sum_src A_e[n, src] used for
      the linear-layer bias term.
    GearNet stacks many layers over the same graph, so this runs once.
    """
    E, N, _ = adj.shape
    _, _, N_dst, _, _, N_src = _dst_src_tiling(N, row_tile, src_tile)
    adj_i8 = jnp.zeros((E, N_dst, N_src), jnp.int8).at[:, :N, :N].set(
        adj.astype(jnp.int8))
    deg = adj.astype(jnp.float32).sum(axis=-1).T       # (N, E)
    return adj_i8, deg


def gearnet_mp_kernel(adj_ref, hv_ref, w_ref, bias_ref, bn_ref, *rest,
                      last_layer):
    """Grid = (dst-row tiles ["parallel"], src K tiles, etypes) — both
    reduction axes innermost.  The output block index depends only on the row
    tile, so it stays resident in VMEM across the whole (k, e) reduction and
    doubles as the f32 accumulator (no scratch, no final copy)."""
    if last_layer:
        res_ref, out_ref = rest
    else:
        (out_ref,) = rest

    k = pl.program_id(1)          # src-node tile (reduction)
    e = pl.program_id(2)          # edge type     (reduction, innermost)
    last_k = pl.num_programs(1) - 1
    last_e = pl.num_programs(2) - 1

    @pl.when((k == 0) & (e == 0))
    def _():
        # Seed the resident accumulator with the pre-aggregated bias term
        #   sum_e deg_e (x) b_e  (= sum_e A_e @ (1 (x) b_e)).
        out_ref[...] = bias_ref[...]

    # int8 0/1 adjacency -> bf16 on the VPU (exact), then two MXU dots:
    #   (A_e[row, k] @ hv[k]) @ W_e, accumulated in f32.
    adj_f = adj_ref[0].astype(jnp.float32).astype(jnp.bfloat16)
    m = jnp.dot(adj_f, hv_ref[...], preferred_element_type=jnp.float32)
    out_ref[...] += jnp.dot(m.astype(jnp.bfloat16), w_ref[0],
                            preferred_element_type=jnp.float32)

    @pl.when((k == last_k) & (e == last_e))
    def _():
        # original_graph_update: relu(bn1(eu_sum)); dropout == identity (eval).
        # BN (inference) pre-folded to scale/shift in the wrapper.
        # Padded dst rows hold relu(shift) garbage; they are sliced off by the
        # wrapper and must not be consumed elsewhere.
        scale = bn_ref[0:1, :]
        shift = bn_ref[1:2, :]
        hu = jnp.maximum(out_ref[...] * scale + shift, 0.0)
        if last_layer:
            hu = hu + res_ref[...]            # node_update residual
        out_ref[...] = hu


def gearnet_vanilla_forward(hv, adj_i8, deg, w, b, bn_params, *, last_layer,
                            row_tile=512, src_tile=512):
    """hv: (N, H) f32; adj_i8/deg: outputs of prepare_gearnet_adjacency;
    w: (E, H, H); b: (E, 1, H); bn_params: (4, H) = [gamma, beta, mean, var]."""
    N, H = hv.shape
    E = adj_i8.shape[0]
    f32, bf16 = jnp.float32, jnp.bfloat16

    H_pad = _round_up(H, 128)                              # lane-dense feature dim
    TM, n_rows, N_dst, TK, n_src, N_src = _dst_src_tiling(N, row_tile, src_tile)
    assert adj_i8.shape == (E, N_dst, N_src) and adj_i8.dtype == jnp.int8
    assert deg.shape == (N, E)

    # --- pad & cast small operands at the pallas_call boundary ---------------
    hv_b = jnp.zeros((N_src, H_pad), bf16).at[:N, :H].set(hv.astype(bf16))
    w_b = jnp.zeros((E, H_pad, H_pad), bf16).at[:, :H, :H].set(w.astype(bf16))

    # Bias term of the per-etype linears, pre-aggregated through the adjacency.
    bias_init = jnp.zeros((N_dst, H_pad), f32).at[:N, :H].set(
        deg.astype(f32) @ b.reshape(E, H).astype(f32))

    # Fold BatchNorm1d (inference) into a single affine: x*scale + shift.
    gamma, beta = bn_params[0], bn_params[1]
    mean, var = bn_params[2], bn_params[3]
    scale = gamma * jax.lax.rsqrt(var + BN_EPS)
    shift = beta - mean * scale
    bn = jnp.zeros((2, H_pad), f32).at[0, :H].set(scale).at[1, :H].set(shift)

    in_specs = [
        pl.BlockSpec((1, TM, TK), lambda i, k, e: (e, i, k)),        # A_e tile (int8)
        pl.BlockSpec((TK, H_pad), lambda i, k, e: (k, 0)),           # hv src tile (bf16)
        pl.BlockSpec((1, H_pad, H_pad), lambda i, k, e: (e, 0, 0)),  # W_e (bf16)
        pl.BlockSpec((TM, H_pad), lambda i, k, e: (i, 0)),           # bias init (f32)
        pl.BlockSpec((2, H_pad), lambda i, k, e: (0, 0)),            # folded BN
    ]
    inputs = [adj_i8, hv_b, w_b, bias_init, bn]
    if last_layer:
        hv_res = jnp.zeros((N_dst, H_pad), f32).at[:N, :H].set(hv.astype(f32))
        in_specs.append(pl.BlockSpec((TM, H_pad), lambda i, k, e: (i, 0)))
        inputs.append(hv_res)

    # VMEM budget from the actual (double-buffered) block footprint, kept well
    # below v7x's 64 MiB per-TC physical VMEM.  K-tiling bounds this
    # independent of N, so single-buffering constant operands isn't needed.
    footprint = 2 * (TM * TK                 # adj (int8)
                     + TK * H_pad * 2        # hv (bf16)
                     + H_pad * H_pad * 2     # W_e (bf16)
                     + TM * H_pad * 4        # bias init (f32)
                     + 2 * H_pad * 4         # folded BN (f32)
                     + TM * H_pad * 4)       # resident output accumulator (f32)
    if last_layer:
        footprint += 2 * TM * H_pad * 4      # residual (f32)
    vmem_limit = int(min(max(footprint + (8 << 20), 32 << 20), 48 << 20))

    kernel = functools.partial(gearnet_mp_kernel, last_layer=last_layer)
    out = pl.pallas_call(
        kernel,
        out_shape=jax.ShapeDtypeStruct((N_dst, H_pad), f32),
        grid_spec=pltpu.PrefetchScalarGridSpec(
            num_scalar_prefetch=0,
            grid=(n_rows, n_src, E),                 # reductions (k, e) last
            in_specs=in_specs,
            out_specs=pl.BlockSpec((TM, H_pad), lambda i, k, e: (i, 0)),
        ),
        compiler_params=pltpu.CompilerParams(
            dimension_semantics=("parallel", "arbitrary", "arbitrary"),
            vmem_limit_bytes=vmem_limit),
    )(*inputs)

    return out[:N, :H]


def reference_forward(hv, adj, w, b, bn_params, *, last_layer, mimic_bf16=False):
    """Pure-JAX reference.  If mimic_bf16, round at the same points the kernel
    casts to bf16 (hv, A@hv, W); adjacency / bias / accumulation stay f32."""
    f32 = jnp.float32

    def q(x):
        x = x.astype(f32)
        return x.astype(jnp.bfloat16).astype(f32) if mimic_bf16 else x

    E = adj.shape[0]
    H = hv.shape[1]
    gamma, beta = bn_params[0], bn_params[1]
    mean, var = bn_params[2], bn_params[3]

    hv_q = q(hv)
    deg = adj.astype(f32).sum(-1)                       # (E, N)
    eu = deg.T @ b.reshape(E, H).astype(f32)            # bias term (exact f32)
    for e in range(E):
        m = q(adj[e].astype(f32) @ hv_q)                # A_e @ hv
        eu = eu + m @ q(w[e])
    normed = (eu - mean) / jnp.sqrt(var + BN_EPS) * gamma + beta
    hu = jnp.maximum(normed, 0.0)
    return hu + hv.astype(f32) if last_layer else hu


if __name__ == "__main__":
    # Small deterministic synthetic problem.  N=200 with row_tile=96 /
    # src_tile=128 exercises multiple dst-row tiles (3), multiple src K tiles
    # (2), multiple etypes (3), and both row/feature padding (H=32 -> 128).
    N, H, E = 200, 32, 3
    row_tile, src_tile = 96, 128

    key = jax.random.PRNGKey(0)
    k_hv, k_adj, k_w, k_b, k_g, k_be, k_m, k_v = jax.random.split(key, 8)

    hv = jax.random.normal(k_hv, (N, H), dtype=jnp.float32)
    # dense adjacency per edge type: adj[e, dst, src] in {0, 1}
    adj = (jax.random.uniform(k_adj, (E, N, N)) < 0.2).astype(jnp.float32)

    # kernel1[str(e)] = Linear(H, H): PyTorch-style uniform(-1/sqrt(H), 1/sqrt(H))
    bound = 1.0 / np.sqrt(H)
    w = jax.random.uniform(k_w, (E, H, H), minval=-bound, maxval=bound,
                           dtype=jnp.float32)
    b = jax.random.uniform(k_b, (E, 1, H), minval=-bound, maxval=bound,
                           dtype=jnp.float32)

    # BatchNorm1d(hidden_dim) running stats / affine (inference mode); running
    # stats roughly match the scale of the pre-activations, as after training.
    gamma = 1.0 + 0.1 * jax.random.normal(k_g, (H,), dtype=jnp.float32)
    beta = 0.1 * jax.random.normal(k_be, (H,), dtype=jnp.float32)
    running_mean = jax.random.normal(k_m, (H,), dtype=jnp.float32)
    running_var = jax.random.uniform(k_v, (H,), minval=60.0, maxval=120.0,
                                     dtype=jnp.float32)
    bn_params = jnp.stack([gamma, beta, running_mean, running_var], axis=0)

    # Per-graph preprocessing, done ONCE and reused by every layer call.
    adj_i8, deg = prepare_gearnet_adjacency(adj, row_tile=row_tile,
                                            src_tile=src_tile)
    adj_i8, deg = jax.block_until_ready((adj_i8, deg))

    fwd = jax.jit(gearnet_vanilla_forward,
                  static_argnames=("last_layer", "row_tile", "src_tile"))

    for last_layer in (True, False):
        out = fwd(hv, adj_i8, deg, w, b, bn_params, last_layer=last_layer,
                  row_tile=row_tile, src_tile=src_tile)
        out = jax.block_until_ready(out)

        # Tight check against a reference that mirrors the kernel's bf16 casts.
        ref_q = reference_forward(hv, adj, w, b, bn_params,
                                  last_layer=last_layer, mimic_bf16=True)
        np.testing.assert_allclose(np.asarray(out), np.asarray(ref_q),
                                   rtol=1e-2, atol=2e-2)

        # Sanity check against the full-f32 PyTorch-semantics reference.
        ref_f32 = reference_forward(hv, adj, w, b, bn_params,
                                    last_layer=last_layer)
        np.testing.assert_allclose(np.asarray(out), np.asarray(ref_f32),
                                   rtol=5e-2, atol=5e-2)

    print("KERNEL_OK")
</pallas_src>

<mosaic_0001>
module attributes {stable_mosaic.version = 11 : i64} {
  func.func @gearnet_mp_kernel(%arg0: i32, %arg1: i32, %arg2: i32, %arg3: memref<1x96x128xi8, #tpu.memory_space<vmem>>, %arg4: memref<128x128xbf16, #tpu.memory_space<vmem>>, %arg5: memref<1x128x128xbf16, #tpu.memory_space<vmem>>, %arg6: memref<96x128xf32, #tpu.memory_space<vmem>>, %arg7: memref<2x128xf32, #tpu.memory_space<vmem>>, %arg8: memref<96x128xf32, #tpu.memory_space<vmem>>, %arg9: memref<96x128xf32, #tpu.memory_space<vmem>>) attributes {dimension_semantics = [#tpu.dimension_semantics<parallel>, #tpu.dimension_semantics<arbitrary>, #tpu.dimension_semantics<arbitrary>], iteration_bounds = array<i64: 3, 2, 3>, scalar_prefetch = 0 : i64, scratch_operands = 0 : i64, tpu.core_type = #tpu.core_type<tc>, window_params = [{transform_indices = @transform_0, window_bounds = array<i64: 1, 96, 128>}, {transform_indices = @transform_1, window_bounds = array<i64: 128, 128>}, {transform_indices = @transform_2, window_bounds = array<i64: 1, 128, 128>}, {transform_indices = @transform_3, window_bounds = array<i64: 96, 128>}, {pipeline_mode = #tpu.pipeline_mode<synchronous>, transform_indices = @transform_4, window_bounds = array<i64: 2, 128>}, {transform_indices = @transform_5, window_bounds = array<i64: 96, 128>}, {transform_indices = @transform_6, window_bounds = array<i64: 96, 128>}]} {
    %c0_i32 = arith.constant 0 : i32
    %0 = arith.cmpi eq, %arg1, %c0_i32 : i32
    %c0_i32_0 = arith.constant 0 : i32
    %1 = arith.cmpi eq, %arg2, %c0_i32_0 : i32
    %2 = arith.andi %0, %1 : i1
    %3 = arith.extui %2 : i1 to i32
    %c0_i32_1 = arith.constant 0 : i32
    %4 = arith.cmpi ne, %3, %c0_i32_1 : i32
    scf.if %4 {
      %c0_15 = arith.constant 0 : index
      %c0_16 = arith.constant 0 : index
      %23 = vector.load %arg6[%c0_15, %c0_16] : memref<96x128xf32, #tpu.memory_space<vmem>>, vector<96x128xf32>
      %c0_17 = arith.constant 0 : index
      %c0_18 = arith.constant 0 : index
      %24 = vector.load %arg9[%c0_17, %c0_18] : memref<96x128xf32, #tpu.memory_space<vmem>>, vector<96x128xf32>
      tpu.vector_store %arg9[%c0_17, %c0_18], %23 {strides = array<i32>} : memref<96x128xf32, #tpu.memory_space<vmem>>, vector<96x128xf32>,
    } else {
    }
    %c0 = arith.constant 0 : index
    %c0_2 = arith.constant 0 : index
    %c0_3 = arith.constant 0 : index
    %5 = vector.load %arg3[%c0, %c0_2, %c0_3] : memref<1x96x128xi8, #tpu.memory_space<vmem>>, vector<1x96x128xi8>
    %6 = vector.shape_cast %5 : vector<1x96x128xi8> to vector<96x128xi8>
    %7 = arith.sitofp %6 : vector<96x128xi8> to vector<96x128xf32>
    %8 = arith.truncf %7 : vector<96x128xf32> to vector<96x128xbf16>
    %c0_4 = arith.constant 0 : index
    %c0_5 = arith.constant 0 : index
    %9 = vector.load %arg4[%c0_4, %c0_5] : memref<128x128xbf16, #tpu.memory_space<vmem>>, vector<128x128xbf16>
    %cst = arith.constant dense<0.000000e+00> : vector<96x128xf32>
    %10 = tpu.matmul %8, %9, %cst {dimension_numbers = #tpu.dot_dimension_numbers<[1], [0], [0], [1], [0, 0, 1, 1], [], []>} : vector<96x128xbf16>, vector<128x128xbf16>, vector<96x128xf32> -> vector<96x128xf32>
    %c0_6 = arith.constant 0 : index
    %c0_7 = arith.constant 0 : index
    %11 = vector.load %arg9[%c0_6, %c0_7] : memref<96x128xf32, #tpu.memory_space<vmem>>, vector<96x128xf32>
    %12 = arith.truncf %10 : vector<96x128xf32> to vector<96x128xbf16>
    %c0_8 = arith.constant 0 : index
    %c0_9 = arith.constant 0 : index
    %c0_10 = arith.constant 0 : index
    %13 = vector.load %arg5[%c0_8, %c0_9, %c0_10] : memref<1x128x128xbf16, #tpu.memory_space<vmem>>, vector<1x128x128xbf16>
    %14 = vector.shape_cast %13 : vector<1x128x128xbf16> to vector<128x128xbf16>
    %cst_11 = arith.constant dense<0.000000e+00> : vector<96x128xf32>
    %15 = tpu.matmul %12, %14, %cst_11 {dimension_numbers = #tpu.dot_dimension_numbers<[1], [0], [0], [1], [0, 0, 1, 1], [], []>} : vector<96x128xbf16>, vector<128x128xbf16>, vector<96x128xf32> -> vector<96x128xf32>
    %16 = arith.addf %11, %15 : vector<96x128xf32>
    %c0_12 = arith.constant 0 : index
    %c0_13 = arith.constant 0 : index
    %17 = vector.load %arg9[%c0_12, %c0_13] : memref<96x128xf32, #tpu.memory_space<vmem>>, vector<96x128xf32>
    tpu.vector_store %arg9[%c0_12, %c0_13], %16 {strides = array<i32>} : memref<96x128xf32, #tpu.memory_space<vmem>>, vector<96x128xf32>,
    %c1_i32 = arith.constant 1 : i32
    %18 = arith.cmpi eq, %arg1, %c1_i32 : i32
    %c2_i32 = arith.constant 2 : i32
    %19 = arith.cmpi eq, %arg2, %c2_i32 : i32
    %20 = arith.andi %18, %19 : i1
    %21 = arith.extui %20 : i1 to i32
    %c0_i32_14 = arith.constant 0 : i32
    %22 = arith.cmpi ne, %21, %c0_i32_14 : i32
    scf.if %22 {
      %c0_15 = arith.constant 0 : index
      %c0_16 = arith.constant 0 : index
      %23 = vector.load %arg7[%c0_15, %c0_16] : memref<2x128xf32, #tpu.memory_space<vmem>>, vector<1x128xf32>
      %c1 = arith.constant 1 : index
      %c0_17 = arith.constant 0 : index
      %24 = vector.load %arg7[%c1, %c0_17] : memref<2x128xf32, #tpu.memory_space<vmem>>, vector<1x128xf32>
      %c0_18 = arith.constant 0 : index
      %c0_19 = arith.constant 0 : index
      %25 = vector.load %arg9[%c0_18, %c0_19] : memref<96x128xf32, #tpu.memory_space<vmem>>, vector<96x128xf32>
      %26 = vector.broadcast %23 : vector<1x128xf32> to vector<96x128xf32>
      %27 = arith.mulf %25, %26 : vector<96x128xf32>
      %28 = vector.broadcast %24 : vector<1x128xf32> to vector<96x128xf32>
      %29 = arith.addf %27, %28 : vector<96x128xf32>
      %cst_20 = arith.constant 0.000000e+00 : f32
      %30 = vector.broadcast %cst_20 : f32 to vector<96x128xf32>
      %31 = arith.maximumf %29, %30 : vector<96x128xf32>
      %c0_21 = arith.constant 0 : index
      %c0_22 = arith.constant 0 : index
      %32 = vector.load %arg8[%c0_21, %c0_22] : memref<96x128xf32, #tpu.memory_space<vmem>>, vector<96x128xf32>
      %33 = arith.addf %31, %32 : vector<96x128xf32>
      %c0_23 = arith.constant 0 : index
      %c0_24 = arith.constant 0 : index
      %34 = vector.load %arg9[%c0_23, %c0_24] : memref<96x128xf32, #tpu.memory_space<vmem>>, vector<96x128xf32>
      tpu.vector_store %arg9[%c0_23, %c0_24], %33 {strides = array<i32>} : memref<96x128xf32, #tpu.memory_space<vmem>>, vector<96x128xf32>,
    } else {
    }
    return
  }
  func.func @transform_0(%arg0: i32, %arg1: i32, %arg2: i32) -> (i32, i32, i32) {
    %c0_i32 = arith.constant 0 : i32
    return %arg2, %arg0, %arg1 : i32, i32, i32
  }
  func.func @transform_1(%arg0: i32, %arg1: i32, %arg2: i32) -> (i32, i32) {
    %c0_i32 = arith.constant 0 : i32
    %c0_i32_0 = arith.constant 0 : i32
    return %arg1, %c0_i32 : i32, i32
  }
  func.func @transform_2(%arg0: i32, %arg1: i32, %arg2: i32) -> (i32, i32, i32) {
    %c0_i32 = arith.constant 0 : i32
    %c0_i32_0 = arith.constant 0 : i32
    %c0_i32_1 = arith.constant 0 : i32
    return %arg2, %c0_i32, %c0_i32_0 : i32, i32, i32
  }
  func.func @transform_3(%arg0: i32, %arg1: i32, %arg2: i32) -> (i32, i32) {
    %c0_i32 = arith.constant 0 : i32
    %c0_i32_0 = arith.constant 0 : i32
    return %arg0, %c0_i32 : i32, i32
  }
  func.func @transform_4(%arg0: i32, %arg1: i32, %arg2: i32) -> (i32, i32) {
    %c0_i32 = arith.constant 0 : i32
    %c0_i32_0 = arith.constant 0 : i32
    %c0_i32_1 = arith.constant 0 : i32
    return %c0_i32, %c0_i32_0 : i32, i32
  }
  func.func @transform_5(%arg0: i32, %arg1: i32, %arg2: i32) -> (i32, i32) {
    %c0_i32 = arith.constant 0 : i32
    %c0_i32_0 = arith.constant 0 : i32
    return %arg0, %c0_i32 : i32, i32
  }
  func.func @transform_6(%arg0: i32, %arg1: i32, %arg2: i32) -> (i32, i32) {
    %c0_i32 = arith.constant 0 : i32
    %c0_i32_0 = arith.constant 0 : i32
    return %arg0, %c0_i32 : i32, i32
  }
}

</mosaic_0001>

<bundles_post_ra>
// kernel: gearnet_vanilla_forward.1
= control target key start
LH: loop header
LB: loop body
LE: loop exit
PB: predicated region body
PF: predicated region fallthrough
CT: control target
= control target key end

     0   :  { %s1596_s0 = inlined_call_operand.vmem [shape: s8[3,288,256], index: 0, kind: input, shape index: {}]   ;;  %s1597_s1 = inlined_call_operand.vmem [shape: bf16[256,128], index: 1, kind: input, shape index: {}]   ;;  %s1598_s2 = inlined_call_operand.vmem [shape: bf16[3,128,128], index: 2, kind: input, shape index: {}]   ;;  %s1599_s3 = inlined_call_operand.vmem [shape: f32[288,128], index: 3, kind: input, shape index: {}]   ;;  %s1600_s4 = inlined_call_operand.vmem [shape: f32[2,128], index: 4, kind: input, shape index: {}]   ;;  %s1601_s5 = inlined_call_operand.vmem [shape: f32[288,128], index: 5, kind: input, shape index: {}]   ;;  %s1602_s6 = inlined_call_operand.vmem [shape: f32[288,128], index: 6, kind: output, shape index: {}]  }
   0x1   :  { %1606 = sst [smem:[#allocation6_spill]] %s1596_s0 }
   0x2   :  { %s1333_s21 = smov 0   ;;  %s1335_s22 = smov 0  }
   0x3   :  { %s1337_s23 = smov 0   ;;  %s1339_s24 = smov 0  }
   0x4   :  { %s1341_s25 = smov 0   ;;  %s1343_s26 = smov 0  }
   0x5   :  { %s1345_s27 = smov 0   ;;  %s1347_s28 = smov 0  }
   0x6   :  { %s1349_s29 = smov 0  }
   0x7 LB: > { %s28_s30 = sadd.s32 1, %s1284_s26  ;;  %s31_s7 = sadd.s32 1, %s1288_s27  ;;  %s1296_s29 = sphi %s1349_s29, %s16_s29   ;;  %s1292_s28 = sphi %s1347_s28, %s1623_s28   ;;  %s1288_s27 = sphi %s1345_s27, %s1622_s27   ;;  %s1284_s26 = sphi %s1343_s26, %s1621_s26   ;;  %s1280_s25 = sphi %s1341_s25, %s1620_s25   ;;  %s1276_s24 = sphi %s1339_s24, %s1619_s24   ;;  %s1272_s23 = sphi %s1337_s23, %s1618_s23   ;;  %s1268_s22 = sphi %s1335_s22, %s1617_s22   ;;  %s1264_s21 = sphi %s1333_s21, %s1616_s21  }
   0x8   : > { %p29_p0 = scmp.ge.s32.totalorder %s28_s30, 3  ;;  %p53_p1 = scmp.ne.s32.totalorder %s1268_s22, %s1264_s21 }
   0x9   : > { %p54_p2 = scmp.eq.s32.totalorder %s1296_s29, 0  ;;  %s35_s8 = sadd.s32 1, %s1292_s28 }
   0xa   : > { %s1625_s7 = smov (!%p29_p0, %s31_s7), %s1288_s27  ;;  %s1627_s30 = smov (%p29_p0, %s28_s30), 0 }
   0xb   : > { %p33_p3 = scmp.ge.s32.totalorder %s1625_s7, 2  ;;  %p1385_p4 = por %p54_p2, %p53_p1 }
   0xc   : > { %1608 = sst [smem:[#allocation3_spill]] %s1627_s30  ;;  %s39_s10 = ssub.s32 %s1284_s26, %s1627_s30 }
   0xd   : > { %s1629_s8 = smov (!%p33_p3, %s35_s8), %s1292_s28  ;;  %s1631_s7 = smov (%p33_p3, %s1625_s7), 0 }
   0xe   : > { %1609 = sst [smem:[#allocation4_spill]] %s1631_s7  ;;  %p37_p5 = scmp.ge.s32.totalorder %s1629_s8, 3 }
   0xf   : > { %s42_s11 = ssub.s32 %s1288_s27, %s1631_s7  ;;  %s46_s15 = sadd.s32 1, %s1268_s22 }
  0x10   : > { %s1633_s8 = smov (%p37_p5, %s1629_s8), 0  ;;  %p1018_p7 = scmp.ge.s32.totalorder %s1296_s29, 18 }
  0x11   : > { %1610 = sst [smem:[#allocation5_spill]] %s1633_s8  ;;  %s40_s12 = ssub.s32 %s1292_s28, %s1633_s8 }
  0x12   : > { %s41_s13 = sor.u32 %s40_s12, %s39_s10  ;;  %233 = sbr.rel (%p1018_p7) target bundleno = 34 (0x22), region = 20 }
  0x13   : > { %s43_s14 = sor.u32 %s42_s11, %s41_s13 }
  0x14   : > { %p44_p6 = scmp.eq.s32.totalorder %s43_s14, 0 }
  0x16   : > { %s1404_s16 = scalar_select %p44_p6, %s1268_s22, %s46_s15  }
  0x17   : > { %236 = sbr.rel (!%p1385_p4) target bundleno = 34 (0x22), region = 24  ;;  %s238_s17 = sand.u32 (%p1385_p4), 1, %s1268_s22  }
  0x18   : > { %s1049_s18 = smul.u32 (%p1385_p4), 6, %s1292_s28  ;;  %s1611_s0 = sld [smem:[#allocation6_spill]] (%p1385_p4) }
  0x19   : > { %s1135_s19 = smul.u32 (%p1385_p4), 24, %s238_s17 }
  0x1a   : > { %s243_s20 = sadd.s32 (%p1385_p4), %s1288_s27, %s1049_s18  ;;  %s1136_s10 = smul.u32 (%p1385_p4), 18, %s1284_s26 }
  0x1b   : > { %s240_s9 = scalar_lea.vmem (%p1385_p4), [#allocation2], %s1135_s19 }
  0x1c   : > { %s245_s11 = sadd.s32 %s1136_s10, %s243_s20 }
  0x1d   : > { %s1020_s12 = sshll.u32 %s245_s11, 3 }
  0x1e   : > { %s247_s15 = scalar_lea.vmem %s1611_s0, %s1020_s12 }
  0x1f   : > { %v280_v0 = vld [vmem:[%s247_s15] sm:$0xff]  ;;  %v282_v1 = vld [vmem:[%s247_s15 + $0x10] sm:$0xff] }
  0x20   : > { %v284_v2 = vld [vmem:[%s247_s15 + $0x20] sm:$0xff]  ;;  %281 = vst [vmem:[%s240_s9] sm:$0xff] %v280_v0  ;;  %283 = vst [vmem:[%s240_s9 + $0x8] sm:$0xff] %v282_v1 }
  0x21   : > { %285 = vst [vmem:[%s240_s9 + $0x10] sm:$0xff] %v284_v2 }
  0x22 PF: > { %p1021_p8 = scmp.ge.s32.totalorder %s1296_s29, 1  ;;  %p325_p9 = scmp.lt.s32.totalorder %s1296_s29, 19 }
  0x24   : > { %p326_p10 = pnand %p1021_p8, %p325_p9 }
  0x25   : > { %s332_s17 = sand.u32 (!%p326_p10), 1, %s1264_s21   ;;  %s1022_s18 = sshll.u32 (!%p326_p10), %s1276_s24, 4 }
  0x26   : > { %329 = sbr.rel (%p326_p10) target bundleno = 533 (0x215), region = 78  ;;  %p383_p11 = scmp.lt.s32.totalorder (!%p326_p10), %s1022_s18, 31 }
  0x27   : > { %s1137_s19 = smul.u32 (!%p326_p10), 24, %s332_s17  ;;  %p388_p12 = scmp.lt.s32.totalorder (!%p326_p10), %s1272_s23, 2 }
  0x28   : > { %s393_s20 = smul.u32 (!%p326_p10), 12, %s1280_s25  ;;  %p412_p13 = scmp.eq.s32.totalorder (!%p326_p10), %s1276_s24, 0 }
  0x29   : > { %p413_p1 = scmp.eq.s32.totalorder (!%p326_p10), %s1272_s23, 0  ;;  %s1448_s0 = scalar_lea.vmem (!%p326_p10), [#allocation2], %s1137_s19 }
  0x2a   : > { %p394_p0 = scmp.lt.s32.totalorder (!%p326_p10), %s393_s20, 35 }
  0x2b   : > { %s1635_s18 = smov (!%p383_p11, %s1022_s18), 31  ;;  %p414_p2 = pnand %p413_p1, %p412_p13 }
  0x2c   : > { %s389_s10 = scalar_select %p388_p12, %s1272_s23, 2 }
  0x2d   : > { %s1023_s11 = sshll.u32 %s1635_s18, 2  ;;  %s1637_s20 = smov (!%p394_p0, %s393_s20), 35 }
  0x2e   : > { %s1427_s14 = scalar_lea.vmem %s1597_s1, %s1023_s11  ;;  %s1050_s15 = sshll.u32 %s389_s10, 6 }
  0x2f   : > { %s1432_s21 = scalar_lea.vmem %s1598_s2, %s1050_s15  ;;  %s1026_s25 = sshll.u32 %s1637_s20, 3 }
  0x30   : > { %s397_s18 = scalar_lea.vmem %s1599_s3, %s1026_s25  ;;  %s1441_s12 = scalar_lea.vmem %s1601_s5, %s1026_s25 }
  0x31   : > { %s1446_s13 = scalar_lea.vmem %s1602_s6, %s1026_s25  ;;  %417 = sbr.rel (%p414_p2) target bundleno = 61 (0x3d), region = 86 }
  0x36   : > { %v418_v3 = vld [vmem:[%s397_s18] sm:$0xff]  ;;  %v419_v4 = vld [vmem:[%s397_s18 + $0x8] sm:$0xff]  ;;  %v420_v5 = vld [vmem:[%s397_s18 + $0x10] sm:$0xff] }
  0x37   : > { %430 = vst [vmem:[%s1446_s13] sm:$0xff] %v418_v3  ;;  %431 = vst [vmem:[%s1446_s13 + $0x8] sm:$0xff] %v419_v4  ;;  %v421_v6 = vld [vmem:[%s397_s18 + $0x18] sm:$0xff]  ;;  %v422_v7 = vld [vmem:[%s397_s18 + $0x20] sm:$0xff] }
  0x38   : > { %432 = vst [vmem:[%s1446_s13 + $0x10] sm:$0xff] %v420_v5  ;;  %v423_v8 = vld [vmem:[%s397_s18 + $0x28] sm:$0xff]  ;;  %433 = vst [vmem:[%s1446_s13 + $0x18] sm:$0xff] %v421_v6  ;;  %v424_v9 = vld [vmem:[%s397_s18 + $0x30] sm:$0xff] }
  0x39   : > { %434 = vst [vmem:[%s1446_s13 + $0x20] sm:$0xff] %v422_v7  ;;  %435 = vst [vmem:[%s1446_s13 + $0x28] sm:$0xff] %v423_v8  ;;  %v425_v10 = vld [vmem:[%s397_s18 + $0x38] sm:$0xff]  ;;  %v426_v11 = vld [vmem:[%s397_s18 + $0x40] sm:$0xff] }
  0x3a   : > { %436 = vst [vmem:[%s1446_s13 + $0x30] sm:$0xff] %v424_v9  ;;  %437 = vst [vmem:[%s1446_s13 + $0x38] sm:$0xff] %v425_v10  ;;  %v427_v12 = vld [vmem:[%s397_s18 + $0x48] sm:$0xff]  ;;  %v428_v13 = vld [vmem:[%s397_s18 + $0x50] sm:$0xff] }
  0x3b   : > { %438 = vst [vmem:[%s1446_s13 + $0x40] sm:$0xff] %v426_v11  ;;  %v429_v14 = vld [vmem:[%s397_s18 + $0x58] sm:$0xff]  ;;  %439 = vst [vmem:[%s1446_s13 + $0x48] sm:$0xff] %v427_v12 }
  0x3c   : > { %440 = vst [vmem:[%s1446_s13 + $0x50] sm:$0xff] %v428_v13  ;;  %441 = vst [vmem:[%s1446_s13 + $0x58] sm:$0xff] %v429_v14 }
  0x3d PF: > { %v1210_v15 = vld [vmem:[%s1427_s14 + $0x38] sm:$0xff]   ;;  %v1211_v16 = vld [vmem:[%s1427_s14 + $0x30] sm:$0xff]   ;;  %v1212_v17 = vld [vmem:[%s1427_s14 + $0x28] sm:$0xff]   ;;  %p783_p3 = scmp.eq.s32.totalorder %s1276_s24, 1  ;;  %p784_p4 = scmp.eq.s32.totalorder %s1272_s23, 2 }
  0x3e   : > { %1079 = vmatprep.subr.bf16.mxu0 %v1210_v15  ;;  %v1213_v18 = vld [vmem:[%s1427_s14 + $0x20] sm:$0xff]   ;;  %v1218_v21 = vld [vmem:[%s1432_s21 + $0x38] sm:$0xff]   ;;  %v1219_v22 = vld [vmem:[%s1432_s21 + $0x30] sm:$0xff]  }
  0x3f   : > { %1080 = vmatpush3.bf16.msra.mxu0 %v1210_v15  ;;  %v442_v19 = vld [vmem:[%s1448_s0] sm:$0xff]  ;;  %1107 = vmatprep.subr.bf16.mxu1 %v1218_v21  ;;  %v1220_v24 = vld [vmem:[%s1432_s21 + $0x28] sm:$0xff]   ;;  %v1215_v25 = vld [vmem:[%s1427_s14 + $0x10] sm:$0xff]   ;;  %p1483_p5 = pnand %p784_p4, %p783_p3 }
  0x40   : > { %1081 = vmatprep.subr.bf16.mxu0 %v1211_v16  ;;  %v445_v20 = vunpack.c.l.s8.bf16 %v442_v19  ;;  %v1214_v23 = vld [vmem:[%s1427_s14 + $0x18] sm:$0xff]   ;;  %1108 = vmatpush3.bf16.msra.mxu1 %v1218_v21  ;;  %v1221_v26 = vld [vmem:[%s1432_s21 + $0x20] sm:$0xff]   ;;  %v1216_v27 = vld [vmem:[%s1427_s14 + $0x8] sm:$0xff]   ;;  %v446_v32 = vunpack.c.h.s8.bf16 %v442_v19 }
  0x41   : > { %1109 = vmatprep.subr.bf16.mxu1 %v1219_v22  ;;  %v1222_v28 = vld [vmem:[%s1432_s21 + $0x18] sm:$0xff]   ;;  %v1217_v29 = vld [vmem:[%s1427_s14] sm:$0xff]   ;;  %v1223_v30 = vld [vmem:[%s1432_s21 + $0x10] sm:$0xff]  }
  0x42   : > { %1095 = vmatprep.mubr.bf16.mxu0 %v445_v20  ;;  %v443_v31 = vld [vmem:[%s1448_s0 + $0x8] sm:$0xff]  ;;  %v444_v34 = vld [vmem:[%s1448_s0 + $0x10] sm:$0xff]  ;;  %v599_v63 = vld [vmem:[%s1446_s13 + $0x18] sm:$0xff] }
  0x43   : > { %1082 = vmatpush3.bf16.msra.mxu0 %v1211_v16  ;;  %v447_v33 = vunpack.c.l.s8.bf16 %v443_v31  ;;  %v448_v35 = vunpack.c.h.s8.bf16 %v443_v31  ;;  %v449_v36 = vunpack.c.l.s8.bf16 %v444_v34  ;;  %v450_v37 = vunpack.c.h.s8.bf16 %v444_v34  ;;  %v1224_v38 = vld [vmem:[%s1432_s21 + $0x8] sm:$0xff]   ;;  %v1225_v39 = vld [vmem:[%s1432_s21] sm:$0xff]   ;;  %v598_v58 = vld [vmem:[%s1446_s13 + $0x10] sm:$0xff] }
  0x44   : > { %1083 = vmatprep.subr.bf16.mxu0 %v1212_v17  ;;  %1110 = vmatpush3.bf16.msra.mxu1 %v1219_v22  ;;  %v596_v60 = vld [vmem:[%s1446_s13] sm:$0xff]  ;;  %v597_v2 = vld [vmem:[%s1446_s13 + $0x8] sm:$0xff]  ;;  %v602_v5 = vld [vmem:[%s1446_s13 + $0x30] sm:$0xff] }
  0x45   : > { %1111 = vmatprep.subr.bf16.mxu1 %v1220_v24  ;;  %v600_v8 = vld [vmem:[%s1446_s13 + $0x20] sm:$0xff]  ;;  %v603_v11 = vld [vmem:[%s1446_s13 + $0x38] sm:$0xff]  ;;  %v601_v14 = vld [vmem:[%s1446_s13 + $0x28] sm:$0xff] }
  0x46   : > { %v604_v20 = vld [vmem:[%s1446_s13 + $0x40] sm:$0xff] }
  0x47   : > { %1084 = vmatpush3.bf16.msra.mxu0 %v1212_v17  ;;  %v606_v17 = vld [vmem:[%s1446_s13 + $0x50] sm:$0xff] }
  0x48   : > { %1085 = vmatprep.subr.bf16.mxu0 %v1213_v18  ;;  %1112 = vmatpush3.bf16.msra.mxu1 %v1220_v24 }
  0x49   : > { %1113 = vmatprep.subr.bf16.mxu1 %v1221_v26 }
  0x4b   : > { %1086 = vmatpush3.bf16.msra.mxu0 %v1213_v18 }
  0x4c   : > { %1087 = vmatprep.subr.bf16.mxu0 %v1214_v23  ;;  %1114 = vmatpush3.bf16.msra.mxu1 %v1221_v26  ;;  %v605_v26 = vld [vmem:[%s1446_s13 + $0x48] sm:$0xff] }
  0x4d   : > { %1115 = vmatprep.subr.bf16.mxu1 %v1222_v28 }
  0x4f   : > { %1088 = vmatpush3.bf16.msra.mxu0 %v1214_v23  ;;  %v607_v23 = vld [vmem:[%s1446_s13 + $0x58] sm:$0xff] }
  0x50   : > { %1089 = vmatprep.subr.bf16.mxu0 %v1215_v25  ;;  %1116 = vmatpush3.bf16.msra.mxu1 %v1222_v28 }
  0x51   : > { %1117 = vmatprep.subr.bf16.mxu1 %v1223_v30 }
  0x53   : > { %1090 = vmatpush3.bf16.msra.mxu0 %v1215_v25 }
  0x54   : > { %1091 = vmatprep.subr.bf16.mxu0 %v1216_v27  ;;  %1118 = vmatpush3.bf16.msra.mxu1 %v1223_v30 }
  0x55   : > { %1119 = vmatprep.subr.bf16.mxu1 %v1224_v38 }
  0x57   : > { %1092 = vmatpush3.bf16.msra.mxu0 %v1216_v27 }
  0x58   : > { %1093 = vmatprep.subr.bf16.mxu0 %v1217_v29  ;;  %1120 = vmatpush3.bf16.msra.mxu1 %v1224_v38 }
  0x59   : > { %1121 = vmatprep.subr.bf16.mxu1 %v1225_v39 }
  0x5b   : > { %1094 = vmatpush3.bf16.msra.mxu0 %v1217_v29 }
  0x5c   : > { %1122 = vmatpush3.bf16.msra.mxu1 %v1225_v39 }
  0x5e   : > { %1096 = vmatmul.mubr.bf16.vlgmr.msra.gmra.mxu0 %v446_v32 }
  0x5f   : > { %1099 = vmatprep.mubr.bf16.mxu0 %v447_v33 }
  0x66   : > { %1100 = vmatmul.mubr.bf16.gmra.mxu0 %v448_v35 }
  0x67   : > { %1103 = vmatprep.mubr.bf16.mxu0 %v449_v36 }
  0x6e   : > { %1104 = vmatmul.mubr.bf16.gmra.mxu0 %v450_v37 }
 0x11e   : > { %v1097_v40 = vpop.f32.mrf.mxu0 }
 0x120   : > { %v549_v41 = vpop.f32.mrf.mxu0 }
 0x122   : > { %v1098_v42 = vpop.f32.mrf.mxu0 }
 0x123   : > { %v609_v45 = vpack.c.bf16 %v1098_v42, %v1097_v40 }
 0x124   : > { %v552_v43 = vpop.f32.mrf.mxu0 }
 0x125   : > { %v608_v44 = vpack.c.bf16 %v552_v43, %v549_v41 }
 0x126   : > { %v1101_v46 = vpop.f32.mrf.mxu0 }
 0x127   : > { %1123 = vmatprep.mubr.bf16.mxu1 %v608_v44 }
 0x128   : > { %v565_v47 = vpop.f32.mrf.mxu0  ;;  %1124 = vmatmul.mubr.bf16.vlgmr.msra.gmra.mxu1 %v609_v45 }
 0x12a   : > { %v1102_v48 = vpop.f32.mrf.mxu0 }
 0x12b   : > { %v611_v51 = vpack.c.bf16 %v1102_v48, %v1101_v46 }
 0x12c   : > { %v568_v49 = vpop.f32.mrf.mxu0 }
 0x12d   : > { %v610_v50 = vpack.c.bf16 %v568_v49, %v565_v47 }
 0x12e   : > { %v1105_v52 = vpop.f32.mrf.mxu0 }
 0x12f   : > { %1127 = vmatprep.mubr.bf16.mxu1 %v610_v50 }
 0x130   : > { %v581_v53 = vpop.f32.mrf.mxu0  ;;  %1128 = vmatmul.mubr.bf16.gmra.mxu1 %v611_v51 }
 0x132   : > { %v1106_v54 = vpop.f32.mrf.mxu0 }
 0x133   : > { %v613_v57 = vpack.c.bf16 %v1106_v54, %v1105_v52 }
 0x134   : > { %v584_v55 = vpop.f32.mrf.mxu0 }
 0x135   : > { %v612_v56 = vpack.c.bf16 %v584_v55, %v581_v53 }
 0x137   : > { %1131 = vmatprep.mubr.bf16.mxu1 %v612_v56 }
 0x138   : > { %1132 = vmatmul.mubr.bf16.gmra.mxu1 %v613_v57 }
 0x1e8   : > { %v1125_v59 = vpop.f32.mrf.mxu1 }
 0x1e9   : > { %v761_v61 = vadd.f32 %v1125_v59, %v598_v58 }
 0x1ea   : > { %v712_v62 = vpop.f32.mrf.mxu1 }
 0x1eb   : > { %773 = vst [vmem:[%s1446_s13 + $0x10] sm:$0xff] %v761_v61  ;;  %v759_v0 = vadd.f32 %v712_v62, %v596_v60 }
 0x1ec   : > { %v1126_v1 = vpop.f32.mrf.mxu1 }
 0x1ed   : > { %771 = vst [vmem:[%s1446_s13] sm:$0xff] %v759_v0  ;;  %v762_v3 = vadd.f32 %v1126_v1, %v599_v63 }
 0x1ee   : > { %v715_v4 = vpop.f32.mrf.mxu1 }
 0x1ef   : > { %774 = vst [vmem:[%s1446_s13 + $0x18] sm:$0xff] %v762_v3  ;;  %v760_v6 = vadd.f32 %v715_v4, %v597_v2 }
 0x1f0   : > { %v1129_v7 = vpop.f32.mrf.mxu1 }
 0x1f1   : > { %772 = vst [vmem:[%s1446_s13 + $0x8] sm:$0xff] %v760_v6  ;;  %v765_v9 = vadd.f32 %v1129_v7, %v602_v5 }
 0x1f2   : > { %v728_v10 = vpop.f32.mrf.mxu1 }
 0x1f3   : > { %777 = vst [vmem:[%s1446_s13 + $0x30] sm:$0xff] %v765_v9  ;;  %v763_v12 = vadd.f32 %v728_v10, %v600_v8 }
 0x1f4   : > { %v1130_v13 = vpop.f32.mrf.mxu1 }
 0x1f5   : > { %775 = vst [vmem:[%s1446_s13 + $0x20] sm:$0xff] %v763_v12  ;;  %v766_v15 = vadd.f32 %v1130_v13, %v603_v11 }
 0x1f6   : > { %v731_v16 = vpop.f32.mrf.mxu1 }
 0x1f7   : > { %778 = vst [vmem:[%s1446_s13 + $0x38] sm:$0xff] %v766_v15  ;;  %v764_v18 = vadd.f32 %v731_v16, %v601_v14 }
 0x1f8   : > { %v1133_v19 = vpop.f32.mrf.mxu1 }
 0x1f9   : > { %776 = vst [vmem:[%s1446_s13 + $0x28] sm:$0xff] %v764_v18  ;;  %v769_v21 = vadd.f32 %v1133_v19, %v606_v17 }
 0x1fa   : > { %v744_v22 = vpop.f32.mrf.mxu1 }
 0x1fb   : > { %781 = vst [vmem:[%s1446_s13 + $0x50] sm:$0xff] %v769_v21  ;;  %v767_v24 = vadd.f32 %v744_v22, %v604_v20 }
 0x1fc   : > { %v1134_v25 = vpop.f32.mrf.mxu1 }
 0x1fd   : > { %779 = vst [vmem:[%s1446_s13 + $0x40] sm:$0xff] %v767_v24  ;;  %v770_v27 = vadd.f32 %v1134_v25, %v607_v23  ;;  %788 = sbr.rel (%p1483_p5) target bundleno = 533 (0x215), region = 90 }
 0x1fe   : > { %v747_v28 = vpop.f32.mrf.mxu1 }
 0x1ff   : > { %782 = vst [vmem:[%s1446_s13 + $0x58] sm:$0xff] %v770_v27  ;;  %v768_v29 = vadd.f32 %v747_v28, %v605_v26 }
 0x201   : > { %780 = vst [vmem:[%s1446_s13 + $0x48] sm:$0xff] %v768_v29 }
 0x202   : > { %v1045_v30 = vld [vmem:[%s1600_s4] ss:$0 sm:$0xff]  ;;  %v1519_v31 = vld [vmem:[%s1600_s4 + $0x1] ss:$0 sm:$0xff]  ;;  %v792_v34 = vld [vmem:[%s1446_s13 + $0x8] sm:$0xff] }
 0x203   : > { %v791_v32 = vld [vmem:[%s1446_s13] sm:$0xff]  ;;  %v808_v35 = vmul.f32 %v1045_v30, %v792_v34  ;;  %v793_v36 = vld [vmem:[%s1446_s13 + $0x10] sm:$0xff]  ;;  %v794_v37 = vld [vmem:[%s1446_s13 + $0x18] sm:$0xff] }
 0x204   : > { %v807_v33 = vmul.f32 %v1045_v30, %v791_v32  ;;  %v809_v39 = vmul.f32 %v1045_v30, %v793_v36  ;;  %v810_v40 = vmul.f32 %v1045_v30, %v794_v37  ;;  %v795_v41 = vld [vmem:[%s1446_s13 + $0x20] sm:$0xff]  ;;  %v796_v45 = vld [vmem:[%s1446_s13 + $0x28] sm:$0xff]  ;;  %v797_v46 = vld [vmem:[%s1446_s13 + $0x30] sm:$0xff] }
 0x205   : > { %v847_v42 = vld [vmem:[%s1441_s12] sm:$0xff]  ;;  %v824_v43 = vadd.f32 %v1519_v31, %v808_v35  ;;  %v811_v44 = vmul.f32 %v1045_v30, %v795_v41  ;;  %v848_v48 = vld [vmem:[%s1441_s12 + $0x8] sm:$0xff]  ;;  %v812_v51 = vmul.f32 %v1045_v30, %v796_v45  ;;  %v798_v52 = vld [vmem:[%s1446_s13 + $0x38] sm:$0xff]  ;;  %v813_v57 = vmul.f32 %v1045_v30, %v797_v46 }
 0x206   : > { %v823_v38 = vadd.f32 %v1519_v31, %v807_v33  ;;  %v825_v49 = vadd.f32 %v1519_v31, %v809_v39  ;;  %v826_v50 = vadd.f32 %v1519_v31, %v810_v40  ;;  %v849_v54 = vld [vmem:[%s1441_s12 + $0x10] sm:$0xff]  ;;  %v850_v55 = vld [vmem:[%s1441_s12 + $0x18] sm:$0xff]  ;;  %v814_v58 = vmul.f32 %v1045_v30, %v798_v52  ;;  %v799_v59 = vld [vmem:[%s1446_s13 + $0x40] sm:$0xff] }
 0x207   : > { %v836_v53 = vmax.f32 %v824_v43, 0.0  ;;  %v827_v56 = vadd.f32 %v1519_v31, %v811_v44  ;;  %v851_v63 = vld [vmem:[%s1441_s12 + $0x20] sm:$0xff]  ;;  %v828_v0 = vadd.f32 %v1519_v31, %v812_v51  ;;  %v852_v4 = vld [vmem:[%s1441_s12 + $0x28] sm:$0xff]  ;;  %v829_v5 = vadd.f32 %v1519_v31, %v813_v57  ;;  %v801_v7 = vld [vmem:[%s1446_s13 + $0x50] sm:$0xff] }
 0x208   : > { %v835_v47 = vmax.f32 %v823_v38, 0.0  ;;  %v837_v61 = vmax.f32 %v825_v49, 0.0  ;;  %v838_v62 = vmax.f32 %v826_v50, 0.0  ;;  %v800_v1 = vld [vmem:[%s1446_s13 + $0x48] sm:$0xff]  ;;  %v830_v6 = vadd.f32 %v1519_v31, %v814_v58  ;;  %v802_v8 = vld [vmem:[%s1446_s13 + $0x58] sm:$0xff]  ;;  %v853_v12 = vld [vmem:[%s1441_s12 + $0x30] sm:$0xff] }
 0x209   : > { %v860_v2 = vadd.f32 %v848_v48, %v836_v53  ;;  %v839_v3 = vmax.f32 %v827_v56, 0.0  ;;  %v840_v11 = vmax.f32 %v828_v0, 0.0  ;;  %v854_v13 = vld [vmem:[%s1441_s12 + $0x38] sm:$0xff]  ;;  %v815_v14 = vmul.f32 %v1045_v30, %v799_v59  ;;  %v855_v25 = vld [vmem:[%s1441_s12 + $0x40] sm:$0xff]  ;;  %v856_v28 = vld [vmem:[%s1441_s12 + $0x48] sm:$0xff] }
 0x20a   : > { %v859_v60 = vadd.f32 %v847_v42, %v835_v47  ;;  %v861_v9 = vadd.f32 %v849_v54, %v837_v61  ;;  %v862_v10 = vadd.f32 %v850_v55, %v838_v62  ;;  %v841_v16 = vmax.f32 %v829_v5, 0.0  ;;  %v857_v33 = vld [vmem:[%s1441_s12 + $0x50] sm:$0xff]  ;;  %v858_v34 = vld [vmem:[%s1441_s12 + $0x58] sm:$0xff] }
 0x20b   : > { %872 = vst [vmem:[%s1446_s13 + $0x8] sm:$0xff] %v860_v2  ;;  %v863_v15 = vadd.f32 %v851_v63, %v839_v3  ;;  %v842_v17 = vmax.f32 %v830_v6, 0.0  ;;  %v816_v18 = vmul.f32 %v1045_v30, %v800_v1  ;;  %v864_v19 = vadd.f32 %v852_v4, %v840_v11 }
 0x20c   : > { %871 = vst [vmem:[%s1446_s13] sm:$0xff] %v859_v60  ;;  %873 = vst [vmem:[%s1446_s13 + $0x10] sm:$0xff] %v861_v9  ;;  %v831_v20 = vadd.f32 %v1519_v31, %v815_v14  ;;  %v817_v21 = vmul.f32 %v1045_v30, %v801_v7  ;;  %v818_v22 = vmul.f32 %v1045_v30, %v802_v8 }
 0x20d   : > { %874 = vst [vmem:[%s1446_s13 + $0x18] sm:$0xff] %v862_v10  ;;  %875 = vst [vmem:[%s1446_s13 + $0x20] sm:$0xff] %v863_v15  ;;  %v865_v23 = vadd.f32 %v853_v12, %v841_v16  ;;  %v866_v24 = vadd.f32 %v854_v13, %v842_v17  ;;  %v832_v26 = vadd.f32 %v1519_v31, %v816_v18 }
 0x20e   : > { %876 = vst [vmem:[%s1446_s13 + $0x28] sm:$0xff] %v864_v19  ;;  %v843_v27 = vmax.f32 %v831_v20, 0.0  ;;  %v833_v29 = vadd.f32 %v1519_v31, %v817_v21  ;;  %v834_v32 = vadd.f32 %v1519_v31, %v818_v22 }
 0x20f   : > { %877 = vst [vmem:[%s1446_s13 + $0x30] sm:$0xff] %v865_v23  ;;  %878 = vst [vmem:[%s1446_s13 + $0x38] sm:$0xff] %v866_v24  ;;  %v844_v30 = vmax.f32 %v832_v26, 0.0 }
 0x210   : > { %v867_v35 = vadd.f32 %v855_v25, %v843_v27  ;;  %v845_v36 = vmax.f32 %v833_v29, 0.0  ;;  %v846_v37 = vmax.f32 %v834_v32, 0.0 }
 0x211   : > { %v868_v38 = vadd.f32 %v856_v28, %v844_v30 }
 0x212   : > { %879 = vst [vmem:[%s1446_s13 + $0x40] sm:$0xff] %v867_v35  ;;  %v869_v39 = vadd.f32 %v857_v33, %v845_v36  ;;  %v870_v40 = vadd.f32 %v858_v34, %v846_v37 }
 0x213   : > { %880 = vst [vmem:[%s1446_s13 + $0x48] sm:$0xff] %v868_v38 }
 0x214   : > { %881 = vst [vmem:[%s1446_s13 + $0x50] sm:$0xff] %v869_v39  ;;  %882 = vst [vmem:[%s1446_s13 + $0x58] sm:$0xff] %v870_v40 }
 0x215 PF: > { %s16_s29 = sadd.s32 1, %s1296_s29   ;;  %s1613_s19 = sld [smem:[#allocation3_spill]] }
 0x216   : > { %p13_p6 = scmp.ge.s32.totalorder %s16_s29, 20   ;;  %s1614_s20 = sld [smem:[#allocation4_spill]] }
 0x217   : > { %s1615_s14 = sld [smem:[#allocation5_spill]]  ;;  %s1616_s21 = smov %s1268_s22 }
 0x218   : > { %s1617_s22 = smov %s1404_s16  ;;  %s1618_s23 = smov %s1284_s26 }
 0x219   : > { %s1619_s24 = smov %s1288_s27  ;;  %s1620_s25 = smov %s1292_s28 }
 0x21a   :  { %15 = sbr.rel (!%p13_p6) target bundleno = 7 (0x7), region = 137 }
 0x21b   : > { %s1621_s26 = smov %s1613_s19 }
 0x21c   : > { %s1622_s27 = smov %s1614_s20 }
 0x21d   : > { %s1623_s28 = smov %s1615_s14 }

</bundles_post_ra>
